<compile_context>
chip_gen: v6e
topology: v6e:2x2x1
jax: 0.10.0
libtpu: 0.0.40
codegen_flags: <defaults>
</compile_context>

<pallas_src>
import jax
import jax.numpy as jnp
from jax.experimental import pallas as pl
from jax.experimental.pallas import tpu as pltpu


# ----------------------------------------------------------------------------
# Schedule setup (mirrors Diffusion.__init__) -- plain JAX glue.
# Also precomputes the sqrt tables so the kernel does zero scalar math.
# ----------------------------------------------------------------------------
def make_schedule(step_count: int, beta_start: float, beta_end: float):
    t = jnp.linspace(0.0, 1.0, step_count, dtype=jnp.float32)
    beta = beta_start + (beta_end - beta_start) * t ** 2
    alpha = 1.0 - beta
    alpha_hat = jnp.cumprod(alpha, axis=0)
    sqrt_ah = jnp.sqrt(alpha_hat)
    sqrt_omah = jnp.sqrt(1.0 - alpha_hat)
    return beta, alpha, alpha_hat, sqrt_ah, sqrt_omah


def _round_up(n: int, m: int) -> int:
    return ((n + m - 1) // m) * m


# ----------------------------------------------------------------------------
# Pallas kernel: per-tile elementwise blend
#   x_t = sqrt(alpha_hat[t]) * x + sqrt(1 - alpha_hat[t]) * noise
# ----------------------------------------------------------------------------
def _diffusion_blend_kernel(t_ref, sqrt_ah_ref, sqrt_omah_ref,   # SMEM (scalar prefetch)
                            x_ref, noise_ref,                    # VMEM inputs (tile)
                            xt_ref):                             # VMEM output (tile)
    t = t_ref[0]
    sa = sqrt_ah_ref[t]        # scalar: sqrt(alpha_hat[t])
    sb = sqrt_omah_ref[t]      # scalar: sqrt(1 - alpha_hat[t])

    # Compute in f32 (bf16-safe on v5e), store back in the output dtype.
    x = x_ref[...].astype(jnp.float32)
    n = noise_ref[...].astype(jnp.float32)
    xt_ref[...] = (sa * x + sb * n).astype(xt_ref.dtype)


# ----------------------------------------------------------------------------
# Wrapper: Pallas equivalent of Diffusion.forward(x, t) -> (x_t, noise).
# ----------------------------------------------------------------------------
def diffusion_forward(x: jax.Array, t, sqrt_ah: jax.Array, sqrt_omah: jax.Array,
                      noise_key, *, lane: int = 1024, max_tile_rows: int = 512,
                      vmem_limit_bytes: int = 48 * 1024 * 1024):
    B, C, L = x.shape
    total = B * C * L

    # Lane-dense slab: collapse everything into (rows, lane) with lane a large
    # multiple of 128 (unmasked vst), rows padded to a multiple of the tile.
    rows = pl.cdiv(total, lane)
    tile_rows = min(max_tile_rows, _round_up(rows, 8))
    rows_p = _round_up(rows, tile_rows)
    grid = (rows_p // tile_rows,)

    x_flat = x.reshape(-1)
    pad = rows_p * lane - total
    if pad:
        x_flat = jnp.pad(x_flat, (0, pad))
    x_slab = x_flat.reshape(rows_p, lane)

    # noise = randn_like(x): generated directly in the padded slab layout.
    noise_slab = jax.random.normal(
        noise_key, (rows_p, lane), dtype=jnp.float32).astype(x.dtype)

    t_arr = jnp.asarray([t], dtype=jnp.int32)

    blk = pl.BlockSpec((tile_rows, lane), lambda i, *_: (i, 0))

    xt_slab = pl.pallas_call(
        _diffusion_blend_kernel,
        grid_spec=pltpu.PrefetchScalarGridSpec(
            num_scalar_prefetch=3,              # t, sqrt(alpha_hat), sqrt(1-alpha_hat)
            grid=grid,
            in_specs=[blk, blk],
            out_specs=blk,
        ),
        out_shape=jax.ShapeDtypeStruct((rows_p, lane), x.dtype),
        compiler_params=pltpu.CompilerParams(
            dimension_semantics=("parallel",),  # independent tiles -> megacore on v7x
            vmem_limit_bytes=vmem_limit_bytes,
        ),
    )(t_arr, sqrt_ah, sqrt_omah, x_slab, noise_slab)

    x_t = xt_slab.reshape(-1)[:total].reshape(B, C, L)
    noise = noise_slab.reshape(-1)[:total].reshape(B, C, L)
    return x_t, noise


# TODO(synk): Diffusion.sample() iteratively calls an external `model` nn.Module
# inside the timestep loop; that model is not part of this module, so only
# forward() is implemented as a kernel.


if __name__ == "__main__":
    # Small, deterministic example consistent with the module: x is (B, 1, length).
    step_count = 100
    data_shape = [1, 128]            # -> self.length = 128
    beta_start, beta_end = 1e-4, 2e-2

    beta, alpha, alpha_hat, sqrt_ah, sqrt_omah = make_schedule(
        step_count, beta_start, beta_end)

    key = jax.random.PRNGKey(0)
    k_x, k_noise = jax.random.split(key)
    B, C, L = 2, 1, data_shape[1]
    x = jax.random.normal(k_x, (B, C, L), dtype=jnp.float32)
    t = 10

    x_t, noise = diffusion_forward(x, t, sqrt_ah, sqrt_omah, k_noise)
    jax.block_until_ready((x_t, noise))

    # Deterministic consistency check (independent of RNG values):
    # x_t must equal sqrt(alpha_hat[t]) * x + sqrt(1 - alpha_hat[t]) * noise.
    a = alpha_hat[t]
    x_t_ref = jnp.sqrt(a) * x + jnp.sqrt(1.0 - a) * noise
    assert x_t.shape == (B, C, L) and noise.shape == (B, C, L)
    assert jnp.max(jnp.abs(x_t - x_t_ref)) < 1e-5, "blend mismatch"
    # Sanity: the generated noise should look roughly standard-normal.
    assert jnp.abs(jnp.mean(noise)) < 0.5 and 0.5 < jnp.std(noise) < 1.5

    print("KERNEL_OK")
</pallas_src>

<mosaic_0001>
module attributes {stable_mosaic.version = 11 : i64} {
  func.func @_diffusion_blend_kernel(%arg0: i32, %arg1: memref<1xi32, #tpu.memory_space<smem>>, %arg2: memref<100xf32, #tpu.memory_space<smem>>, %arg3: memref<100xf32, #tpu.memory_space<smem>>, %arg4: memref<8x1024xf32, #tpu.memory_space<vmem>>, %arg5: memref<8x1024xf32, #tpu.memory_space<vmem>>, %arg6: memref<8x1024xf32, #tpu.memory_space<vmem>>) attributes {dimension_semantics = [#tpu.dimension_semantics<parallel>], iteration_bounds = array<i64: 1>, scalar_prefetch = 3 : i64, scratch_operands = 0 : i64, tpu.core_type = #tpu.core_type<tc>, window_params = [{transform_indices = @transform_0, window_bounds = array<i64: 8, 1024>}, {transform_indices = @transform_1, window_bounds = array<i64: 8, 1024>}, {transform_indices = @transform_2, window_bounds = array<i64: 8, 1024>}]} {
    %c0 = arith.constant 0 : index
    %0 = memref.load %arg1[%c0] : memref<1xi32, #tpu.memory_space<smem>>
    %1 = arith.index_cast %0 : i32 to index
    %2 = memref.load %arg2[%1] : memref<100xf32, #tpu.memory_space<smem>>
    %3 = arith.index_cast %0 : i32 to index
    %4 = memref.load %arg3[%3] : memref<100xf32, #tpu.memory_space<smem>>
    %c0_0 = arith.constant 0 : index
    %c0_1 = arith.constant 0 : index
    %5 = vector.load %arg4[%c0_0, %c0_1] : memref<8x1024xf32, #tpu.memory_space<vmem>>, vector<8x1024xf32>
    %c0_2 = arith.constant 0 : index
    %c0_3 = arith.constant 0 : index
    %6 = vector.load %arg5[%c0_2, %c0_3] : memref<8x1024xf32, #tpu.memory_space<vmem>>, vector<8x1024xf32>
    %7 = vector.broadcast %2 : f32 to vector<8x1024xf32>
    %8 = arith.mulf %7, %5 : vector<8x1024xf32>
    %9 = vector.broadcast %4 : f32 to vector<8x1024xf32>
    %10 = arith.mulf %9, %6 : vector<8x1024xf32>
    %11 = arith.addf %8, %10 : vector<8x1024xf32>
    %c0_4 = arith.constant 0 : index
    %c0_5 = arith.constant 0 : index
    %12 = vector.load %arg6[%c0_4, %c0_5] : memref<8x1024xf32, #tpu.memory_space<vmem>>, vector<8x1024xf32>
    tpu.vector_store %arg6[%c0_4, %c0_5], %11 {strides = array<i32>} : memref<8x1024xf32, #tpu.memory_space<vmem>>, vector<8x1024xf32>,
    return
  }
  func.func @transform_0(%arg0: i32, %arg1: memref<1xi32, #tpu.memory_space<smem>>, %arg2: memref<100xf32, #tpu.memory_space<smem>>, %arg3: memref<100xf32, #tpu.memory_space<smem>>) -> (i32, i32) {
    %c0_i32 = arith.constant 0 : i32
    %c0_i32_0 = arith.constant 0 : i32
    return %arg0, %c0_i32 : i32, i32
  }
  func.func @transform_1(%arg0: i32, %arg1: memref<1xi32, #tpu.memory_space<smem>>, %arg2: memref<100xf32, #tpu.memory_space<smem>>, %arg3: memref<100xf32, #tpu.memory_space<smem>>) -> (i32, i32) {
    %c0_i32 = arith.constant 0 : i32
    %c0_i32_0 = arith.constant 0 : i32
    return %arg0, %c0_i32 : i32, i32
  }
  func.func @transform_2(%arg0: i32, %arg1: memref<1xi32, #tpu.memory_space<smem>>, %arg2: memref<100xf32, #tpu.memory_space<smem>>, %arg3: memref<100xf32, #tpu.memory_space<smem>>) -> (i32, i32) {
    %c0_i32 = arith.constant 0 : i32
    %c0_i32_0 = arith.constant 0 : i32
    return %arg0, %c0_i32 : i32, i32
  }
}

</mosaic_0001>

<bundles_post_ra>
// kernel: tpu_custom_call.1
= control target key start
LH: loop header
LB: loop body
LE: loop exit
PB: predicated region body
PF: predicated region fallthrough
CT: control target
= control target key end

     0   :  { %s272_s0 = inlined_call_operand.<no memory space> [shape: s32[1], index: 0, kind: input, shape index: {}]   ;;  %s273_s1 = inlined_call_operand.vmem [shape: f32[100], index: 1, kind: input, shape index: {}]   ;;  %s274_s3 = inlined_call_operand.hbm [shape: f32[8,1024], index: 3, kind: input, shape index: {}]   ;;  %s275_s4 = inlined_call_operand.hbm [shape: f32[8,1024], index: 4, kind: input, shape index: {}]   ;;  %s276_s5 = inlined_call_operand.hbm [shape: f32[8,1024], index: 5, kind: output, shape index: {}]   ;;  %s277_s2 = inlined_call_operand.vmem [shape: f32[100], index: 2, kind: input, shape index: {}]  }
   0x1   :  { %s11_s20 = sshll.u32 %s273_s1, 4  ;;  %s15_s23 = sshll.u32 %s277_s2, 4  ;;  %s12_s20 = int_to_ptr.vmem [resolvable:$true] %s11_s20  ;;  %s16_s23 = int_to_ptr.vmem [resolvable:$true] %s15_s23 }
   0x2   :  { %s124_s24 = scalar_lea.vmem %s12_s20, 16  ;;  %p129_p1 = scmp.lt.s32.totalorder %s12_s20, %s12_s20 }
   0x3   :  { %p125_p0 = scmp.ne.s32.totalorder %s12_s20, %s124_s24  ;;  %p130_p2 = scmp.lt.s32.totalorder %s124_s24, %s124_s24 }
   0x5   :  { %p131_p3 = por %p130_p2, %p129_p1 }
   0x7   :  { %p132_p4 = pnand %p131_p3, %p125_p0 }
   0x9   :  { %135 = shalt.err (!%p132_p4)  }
   0xa   :  { %s216_s25 = smov [#allocation4]   ;;  %s136_s26 = scalar_lea.vmem %s16_s23, 16 }
   0xb   :  { %14 = dma.vmem_to_smem %s12_s20, 16, %s216_s25, [#allocation2] }
   0xc   :  { %p137_p5 = scmp.ne.s32.totalorder %s16_s23, %s136_s26  ;;  %p141_p6 = scmp.lt.s32.totalorder %s16_s23, %s16_s23 }
   0xd   :  { %p142_p7 = scmp.lt.s32.totalorder %s136_s26, %s136_s26 }
   0xf   :  { %p143_p8 = por %p142_p7, %p141_p6 }
  0x11   :  { %p144_p9 = pnand %p143_p8, %p137_p5 }
  0x13   :  { %147 = shalt.err (!%p144_p9)  }
  0x14   :  { %s217_s1 = smov [#allocation5]  }
  0x15   :  { %18 = dma.vmem_to_smem %s16_s23, 16, %s217_s1, [#allocation2] }
  0x16   :  { %208 = dma.done.wait [#allocation2], 32 }
  0x17   :  { %209 = vsyncadd [#allocation2], 4294967264 }
  0x18   :  { %20 = sfence }
  0x19   :  { %21 = vsyncpa [#allocation7], 0 }
  0x1a   :  { %22 = vsyncpa [#allocation10], 0 }
  0x1b   :  { %23 = vsyncpa [#allocation8], 0  ;;  %s218_s2 = smov [#allocation6]   ;;  %s219_s28 = smov [#allocation9]  }
  0x1c   :  { %s30_s27 = sshll.u32 %s218_s2, 4  ;;  %s40_s29 = sshll.u32 %s219_s28, 4  ;;  %s31_s27 = int_to_ptr.vmem [resolvable:$true] %s30_s27  ;;  %s41_s29 = int_to_ptr.vmem [resolvable:$true] %s40_s29 }
  0x1d   :  { %s156_s30 = scalar_lea.vmem %s31_s27, 1024  ;;  %p161_p11 = scmp.lt.s32.totalorder %s31_s27, %s31_s27 }
  0x1e   :  { %p157_p10 = scmp.ne.s32.totalorder %s31_s27, %s156_s30  ;;  %p162_p12 = scmp.lt.s32.totalorder %s156_s30, %s156_s30 }
  0x20   :  { %p163_p13 = por %p162_p12, %p161_p11 }
  0x22   :  { %p164_p0 = pnand %p163_p13, %p157_p10 }
  0x24   :  { %167 = shalt.err (!%p164_p0)
}
  0x25   :  { %33 = dma.hbm_to_vmem [thread:$0]  %s274_s3, 1024, %s31_s27, [#allocation7]  }
  0x26   :  { %s176_s8 = scalar_lea.vmem %s41_s29, 1024  ;;  %p181_p2 = scmp.lt.s32.totalorder %s41_s29, %s41_s29 }
  0x27   :  { %p177_p1 = scmp.ne.s32.totalorder %s41_s29, %s176_s8  ;;  %p182_p3 = scmp.lt.s32.totalorder %s176_s8, %s176_s8 }
  0x29   :  { %p183_p4 = por %p182_p3, %p181_p2 }
  0x2b   :  { %p184_p5 = pnand %p183_p4, %p177_p1 }
  0x2d   :  { %187 = shalt.err (!%p184_p5)
}
  0x2e   :  { %43 = dma.hbm_to_vmem [thread:$0]  %s275_s4, 1024, %s41_s29, [#allocation10]  }
  0x2f   :  { %210 = dma.done.wait [#allocation7], 1024  }
  0x30   :  { %211 = vsyncadd [#allocation7], 4294966272 }
  0x31   :  { %212 = dma.done.wait [#allocation10], 1024  }
  0x32   :  { %213 = vsyncadd [#allocation10], 4294966272  ;;  %s51_s13 = sld [smem:[#allocation4 + %s272_s0]]  ;;  %v53_v0 = vld [vmem:[#allocation6] sm:$0xff]  ;;  %v54_v3 = vld [vmem:[#allocation6 + $0x8] sm:$0xff] }
  0x33   :  { %s52_s15 = sld [smem:[#allocation5 + %s272_s0]]  ;;  %v61_v1 = vld [vmem:[#allocation9] sm:$0xff]  ;;  %v62_v6 = vld [vmem:[#allocation9 + $0x8] sm:$0xff]  ;;  %v55_v8 = vld [vmem:[#allocation6 + $0x10] sm:$0xff]  ;;  %s220_s0 = smov [#allocation11]  }
  0x34   :  { %v63_v9 = vld [vmem:[#allocation9 + $0x10] sm:$0xff]  ;;  %v56_v14 = vld [vmem:[#allocation6 + $0x18] sm:$0xff]  ;;  %v57_v16 = vld [vmem:[#allocation6 + $0x20] sm:$0xff]  ;;  %s109_s4 = sshll.u32 %s220_s0, 4  ;;  %s110_s4 = int_to_ptr.vmem [resolvable:$true] %s109_s4 }
  0x35   :  { %v64_v15 = vld [vmem:[#allocation9 + $0x18] sm:$0xff]  ;;  %v65_v19 = vld [vmem:[#allocation9 + $0x20] sm:$0xff]  ;;  %v58_v21 = vld [vmem:[#allocation6 + $0x28] sm:$0xff]  ;;  %s188_s16 = scalar_lea.vmem %s110_s4, 1024  ;;  %p193_p7 = scmp.lt.s32.totalorder %s110_s4, %s110_s4 }
  0x36   :  { %v66_v22 = vld [vmem:[#allocation9 + $0x28] sm:$0xff]  ;;  %v59_v27 = vld [vmem:[#allocation6 + $0x30] sm:$0xff]  ;;  %v60_v29 = vld [vmem:[#allocation6 + $0x38] sm:$0xff]  ;;  %p189_p6 = scmp.ne.s32.totalorder %s110_s4, %s188_s16  ;;  %p194_p8 = scmp.lt.s32.totalorder %s188_s16, %s188_s16 }
  0x37   :  { %v67_v28 = vld [vmem:[#allocation9 + $0x30] sm:$0xff]  ;;  %v68_v34 = vld [vmem:[#allocation9 + $0x38] sm:$0xff] }
  0x38   :  { %v69_v2 = vstv %s51_s13  ;;  %p195_p9 = por %p194_p8, %p193_p7 }
  0x39   :  { %v70_v4 = vmul.f32 %v69_v2, %v53_v0  ;;  %v78_v5 = vstv %s52_s15  ;;  %v71_v7 = vmul.f32 %v69_v2, %v54_v3  ;;  %v72_v12 = vmul.f32 %v69_v2, %v55_v8 }
  0x3a   :  { %v79_v10 = vmul.f32 %v78_v5, %v61_v1  ;;  %v80_v11 = vmul.f32 %v78_v5, %v62_v6  ;;  %v81_v13 = vmul.f32 %v78_v5, %v63_v9  ;;  %v73_v17 = vmul.f32 %v69_v2, %v56_v14  ;;  %p196_p10 = pnand %p195_p9, %p189_p6 }
  0x3b   :  { %v82_v18 = vmul.f32 %v78_v5, %v64_v15  ;;  %v74_v20 = vmul.f32 %v69_v2, %v57_v16  ;;  %v83_v26 = vmul.f32 %v78_v5, %v65_v19  ;;  %v75_v31 = vmul.f32 %v69_v2, %v58_v21 }
  0x3c   :  { %v87_v23 = vadd.f32 %v79_v10, %v70_v4  ;;  %v88_v24 = vadd.f32 %v80_v11, %v71_v7  ;;  %v89_v25 = vadd.f32 %v81_v13, %v72_v12  ;;  %v84_v32 = vmul.f32 %v78_v5, %v66_v22 }
  0x3d   :  { %v90_v30 = vadd.f32 %v82_v18, %v73_v17  ;;  %v76_v33 = vmul.f32 %v69_v2, %v59_v27  ;;  %v91_v35 = vadd.f32 %v83_v26, %v74_v20  ;;  %v85_v36 = vmul.f32 %v78_v5, %v67_v28 }
  0x3e   :  { %95 = vst [vmem:[#allocation11] sm:$0xff] %v87_v23  ;;  %96 = vst [vmem:[#allocation11 + $0x8] sm:$0xff] %v88_v24  ;;  %v77_v37 = vmul.f32 %v69_v2, %v60_v29  ;;  %v86_v38 = vmul.f32 %v78_v5, %v68_v34  ;;  %v92_v39 = vadd.f32 %v84_v32, %v75_v31 }
  0x3f   :  { %97 = vst [vmem:[#allocation11 + $0x10] sm:$0xff] %v89_v25  ;;  %98 = vst [vmem:[#allocation11 + $0x18] sm:$0xff] %v90_v30  ;;  %v93_v40 = vadd.f32 %v85_v36, %v76_v33 }
  0x40   :  { %99 = vst [vmem:[#allocation11 + $0x20] sm:$0xff] %v91_v35  ;;  %v94_v41 = vadd.f32 %v86_v38, %v77_v37  ;;  %100 = vst [vmem:[#allocation11 + $0x28] sm:$0xff] %v92_v39 }
  0x41   :  { %101 = vst [vmem:[#allocation11 + $0x30] sm:$0xff] %v93_v40 }
  0x42   :  { %102 = vst [vmem:[#allocation11 + $0x38] sm:$0xff] %v94_v41 }
  0x43   :  { %199 = shalt.err (!%p196_p10)
}
  0x44   :  { %112 = dma.vmem_to_hbm [thread:$0]  %s110_s4, 1024, %s276_s5, [#allocation8]  }
  0x45   :  { %214 = dma.done.wait [#allocation8], 1024  }
  0x46   :  { %215 = vsyncadd [#allocation8], 4294966272 }
  0x47   :  { %116 = vsyncpa [#allocation7], 1 }
  0x48   :  { %117 = vsyncpa [#allocation10], 1 }
  0x49   :  { %118 = vsyncpa [#allocation8], 1 }

</bundles_post_ra>
